<compile_context>
chip_gen: v5e
topology: v5e:2x2
jax: 0.10.0
libtpu: 0.0.40
codegen_flags: <defaults>
</compile_context>

<pallas_src>
import functools

import jax
import jax.numpy as jnp
from jax.experimental import pallas as pl
from jax.experimental.pallas import tpu as pltpu


def _fused_leaky_relu_kernel(x_ref, b_ref, o_ref, *, negative_slope, scale):
    # x_ref / o_ref: (1, TC, COL) VMEM tiles.
    # b_ref: (TC, 1) bias column (standard path) or (TC, COL) bias plane
    #        (packed small-spatial path); both broadcast against x.
    x = x_ref[...]
    b = b_ref[...]
    v = x + b[None]
    pos = jnp.asarray(scale, v.dtype)
    neg = jnp.asarray(scale * negative_slope, v.dtype)
    o_ref[...] = (v * jnp.where(v >= 0, pos, neg)).astype(o_ref.dtype)


def _choose_tiles(rows, width, itemsize):
    """Pick (TC, COL): lane-dense column tile + row tile targeting ~4 MiB."""
    sub = max(8, 32 // itemsize)          # sublane multiple: 8 f32, 16 bf16, 32 i8
    target_bytes = 4 * 1024 * 1024        # ~4 MiB per block (review: 2 -> 4 MiB)
    max_col = 32768                       # prefer full-row blocks when they fit

    if width <= max_col:
        col = width                       # full extent: always legal, contiguous DMA
    else:
        ntiles = pl.cdiv(width, max_col)
        col = ((pl.cdiv(width, ntiles) + 127) // 128) * 128   # balanced, 128-aligned

    tc = max(sub, target_bytes // (col * itemsize))
    tc = (tc // sub) * sub
    if tc >= rows:
        return rows, col                  # full row extent (always legal)
    return tc, col


def fused_leaky_relu(x, bias, negative_slope=0.2, scale=2 ** 0.5,
                     donate_input=False):
    """x: (N, C, H, W), bias: (>=C,). Returns scale * leaky_relu(x + bias)."""
    N, C, H, W = x.shape
    assert bias.shape[0] >= C
    HW = H * W
    itemsize = jnp.dtype(x.dtype).itemsize

    # Mirrors the [:, :x.shape[1]] slice in the PyTorch forward; compute in the
    # input dtype (bf16 stays bf16 on v6e/v7x).
    b = bias[:C].astype(x.dtype)

    # Small-spatial packing: keep the lane axis >= 128 elements wide.
    G = 1
    if HW < 128:
        g = -(-128 // HW)                 # ceil(128 / HW)
        if C % g == 0:
            G = g
    rows, width = C // G, G * HW

    x3 = x.reshape(N, rows, width)        # contiguous merges -> free reshape
    if G == 1:
        b2 = b.reshape(rows, 1)
        bwidth = 1
    else:
        # (rows, width) plane: channel r*G+g repeated HW times along lanes.
        b2 = jnp.repeat(b.reshape(rows, G), HW, axis=1)
        bwidth = width

    TC, COL = _choose_tiles(rows, width, itemsize)

    # Grid: all axes elementwise-parallel.  Largest extent first so the v7x
    # megacore split always has >= 2 work units; ties keep the channel-tile
    # axis outermost so the bias block is fetched once per channel tile.
    extents = {"c": pl.cdiv(rows, TC), "n": N, "j": pl.cdiv(width, COL)}
    order = sorted(("c", "n", "j"), key=lambda k: -extents[k])
    axis_pos = {k: i for i, k in enumerate(order)}
    grid = tuple(extents[k] for k in order)

    def x_map(*g):
        return (g[axis_pos["n"]], g[axis_pos["c"]], g[axis_pos["j"]])

    def b_map(*g):
        return (g[axis_pos["c"]], 0)

    # Real live VMEM footprint: double-buffered in + out blocks + bias.
    block_bytes = TC * COL * itemsize
    bias_bytes = TC * bwidth * itemsize
    live_bytes = 2 * 2 * block_bytes + 2 * bias_bytes
    vmem_limit = int(min(32 << 20, max(16 << 20, live_bytes + (8 << 20))))

    kernel = functools.partial(
        _fused_leaky_relu_kernel,
        negative_slope=negative_slope,
        scale=scale,
    )

    out = pl.pallas_call(
        kernel,
        out_shape=jax.ShapeDtypeStruct((N, rows, width), x.dtype),
        grid=grid,
        in_specs=[
            pl.BlockSpec((1, TC, COL), x_map),
            pl.BlockSpec((TC, bwidth), b_map),
        ],
        out_specs=pl.BlockSpec((1, TC, COL), x_map),
        compiler_params=pltpu.CompilerParams(
            dimension_semantics=("parallel", "parallel", "parallel"),
            vmem_limit_bytes=vmem_limit,
        ),
        cost_estimate=pl.CostEstimate(
            flops=4 * N * C * HW,
            transcendentals=0,
            bytes_accessed=2 * N * C * HW * itemsize + C * itemsize,
        ),
        input_output_aliases=({0: 0} if donate_input else {}),
    )(x3, b2)

    return out.reshape(N, C, H, W)


def _reference(x, bias, negative_slope=0.2, scale=2 ** 0.5):
    b = bias[: x.shape[1]].reshape(1, -1, 1, 1).astype(x.dtype)
    v = x + b
    return scale * jnp.where(v >= 0, v, v * negative_slope)


def _check(x, bias):
    out = jax.block_until_ready(fused_leaky_relu(x, bias))
    ref = _reference(x, bias)
    assert out.shape == x.shape
    err = float(jnp.max(jnp.abs(out - ref)))
    assert jnp.allclose(out, ref, atol=1e-5, rtol=1e-5), err
    return out


if __name__ == "__main__":
    key = jax.random.PRNGKey(0)
    kx, kb, kx2, kb2, kx3, kb3 = jax.random.split(key, 6)

    # Primary shape: standard (lane-dense, HW >= 128) path.
    N, C, H, W = 2, 4, 16, 16
    x = jax.random.normal(kx, (N, C, H, W), dtype=jnp.float32)
    # The module initializes bias to zeros; random values exercise the add.
    bias = jax.random.normal(kb, (C,), dtype=jnp.float32)
    _check(x, bias)

    # Small-spatial packed path (HW < 128, C % G == 0).
    x_small = jax.random.normal(kx2, (2, 8, 4, 4), dtype=jnp.float32)
    b_small = jax.random.normal(kb2, (8,), dtype=jnp.float32)
    _check(x_small, b_small)

    # Small-spatial fallback path (C % G != 0 -> masked stores, still correct).
    x_odd = jax.random.normal(kx3, (2, 6, 4, 4), dtype=jnp.float32)
    b_odd = jax.random.normal(kb3, (6,), dtype=jnp.float32)
    _check(x_odd, b_odd)

    print("KERNEL_OK")
</pallas_src>

<mosaic_0001>
module attributes {stable_mosaic.version = 11 : i64} {
  func.func @_fused_leaky_relu_kernel(%arg0: i32, %arg1: i32, %arg2: i32, %arg3: memref<1x4x256xf32, #tpu.memory_space<vmem>>, %arg4: memref<4x1xf32, #tpu.memory_space<vmem>>, %arg5: memref<1x4x256xf32, #tpu.memory_space<vmem>>) attributes {dimension_semantics = [#tpu.dimension_semantics<parallel>, #tpu.dimension_semantics<parallel>, #tpu.dimension_semantics<parallel>], iteration_bounds = array<i64: 2, 1, 1>, scalar_prefetch = 0 : i64, scratch_operands = 0 : i64, tpu.core_type = #tpu.core_type<tc>, window_params = [{transform_indices = @transform_0, window_bounds = array<i64: 1, 4, 256>}, {transform_indices = @transform_1, window_bounds = array<i64: 4, 1>}, {transform_indices = @transform_2, window_bounds = array<i64: 1, 4, 256>}]} {
    %c0 = arith.constant 0 : index
    %c0_0 = arith.constant 0 : index
    %c0_1 = arith.constant 0 : index
    %0 = vector.load %arg3[%c0, %c0_0, %c0_1] : memref<1x4x256xf32, #tpu.memory_space<vmem>>, vector<1x4x256xf32>
    %c0_2 = arith.constant 0 : index
    %c0_3 = arith.constant 0 : index
    %1 = vector.load %arg4[%c0_2, %c0_3] : memref<4x1xf32, #tpu.memory_space<vmem>>, vector<4x1xf32>
    %2 = vector.shape_cast %1 : vector<4x1xf32> to vector<1x4x1xf32>
    %3 = vector.broadcast %2 : vector<1x4x1xf32> to vector<1x4x256xf32>
    %4 = arith.addf %0, %3 : vector<1x4x256xf32>
    %cst = arith.constant 0.000000e+00 : f32
    %5 = vector.broadcast %cst : f32 to vector<1x4x256xf32>
    %6 = arith.cmpf oge, %4, %5 : vector<1x4x256xf32>
    %cst_4 = arith.constant 1.41421354 : f32
    %cst_5 = arith.constant 0.282842726 : f32
    %7 = vector.broadcast %cst_4 : f32 to vector<1x4x256xf32>
    %8 = vector.broadcast %cst_5 : f32 to vector<1x4x256xf32>
    %9 = arith.select %6, %7, %8 : vector<1x4x256xi1>, vector<1x4x256xf32>
    %10 = arith.mulf %4, %9 : vector<1x4x256xf32>
    %c0_6 = arith.constant 0 : index
    %c0_7 = arith.constant 0 : index
    %c0_8 = arith.constant 0 : index
    %11 = vector.load %arg5[%c0_6, %c0_7, %c0_8] : memref<1x4x256xf32, #tpu.memory_space<vmem>>, vector<1x4x256xf32>
    tpu.vector_store %arg5[%c0_6, %c0_7, %c0_8], %10 {strides = array<i32>} : memref<1x4x256xf32, #tpu.memory_space<vmem>>, vector<1x4x256xf32>,
    return
  }
  func.func @transform_0(%arg0: i32, %arg1: i32, %arg2: i32) -> (i32, i32, i32) {
    %c0_i32 = arith.constant 0 : i32
    return %arg0, %arg1, %arg2 : i32, i32, i32
  }
  func.func @transform_1(%arg0: i32, %arg1: i32, %arg2: i32) -> (i32, i32) {
    %c0_i32 = arith.constant 0 : i32
    %c0_i32_0 = arith.constant 0 : i32
    return %arg1, %c0_i32 : i32, i32
  }
  func.func @transform_2(%arg0: i32, %arg1: i32, %arg2: i32) -> (i32, i32, i32) {
    %c0_i32 = arith.constant 0 : i32
    return %arg0, %arg1, %arg2 : i32, i32, i32
  }
}

</mosaic_0001>

<bundles_post_ra>
// kernel: tpu_custom_call.1
= control target key start
LH: loop header
LB: loop body
LE: loop exit
PB: predicated region body
PF: predicated region fallthrough
CT: control target
= control target key end

     0   :  { %7 = vsyncpa [#allocation3], 0  ;;  %s694_s0 = inlined_call_operand.hbm [shape: f32[2,4,256], index: 0, kind: input, shape index: {}]   ;;  %s695_s1 = inlined_call_operand.vmem [shape: f32[4,1], index: 1, kind: input, shape index: {}]   ;;  %s696_s2 = inlined_call_operand.hbm [shape: f32[2,4,256], index: 2, kind: output, shape index: {}]  }
   0x1   :  { %9 = vsyncpa [#allocation3 + $0x1], 0 }
   0x2   :  { %10 = vsyncpa [#allocation4], 0 }
   0x3   :  { %12 = vsyncpa [#allocation4 + $0x1], 0  ;;  %s571_s9 = smov 0   ;;  %s573_s10 = smov 0  }
   0x4   :  { %s575_s11 = smov 0   ;;  %s577_s12 = smov 0  }
   0x5   :  { %s579_s13 = smov 0   ;;  %s581_s14 = smov 0  }
   0x6 LB: > { %s355_s15 = sadd.s32 4294967295, %s551_s14   ;;  %s356_s16 = sadd.s32 4294967294, %s551_s14   ;;  %s551_s14 = sphi %s581_s14, %s18_s14   ;;  %s547_s13 = sphi %s579_s13, %s705_s13   ;;  %s543_s12 = sphi %s577_s12, %s704_s12   ;;  %s539_s11 = sphi %s575_s11, %s703_s11   ;;  %s535_s10 = sphi %s573_s10, %s702_s10   ;;  %s531_s9 = sphi %s571_s9, %s701_s9  }
   0x7   : > { %s37_s17 = sadd.s32 1, %s547_s13  ;;  %s48_s18 = sadd.s32 1, %s539_s11 }
   0x8   : > { %p39_p0 = scmp.ge.s32.totalorder %s37_s17, 2  ;;  %p55_p1 = scmp.ne.s32.totalorder %s539_s11, %s535_s10 }
   0x9   : > { %p56_p2 = scmp.eq.s32.totalorder %s551_s14, 0  ;;  %p61_p3 = scmp.ne.s32.totalorder %s535_s10, %s531_s9 }
   0xa   : > { %s707_s17 = smov (%p39_p0, %s37_s17), 0  ;;  %p62_p5 = scmp.eq.s32.totalorder %s355_s15, 0 }
   0xb   : > { %p612_p4 = por %p56_p2, %p55_p1  ;;  %s41_s20 = ssub.s32 %s547_s13, %s707_s17 }
   0xc   : > { %p115_p6 = scmp.eq.s32.totalorder %s355_s15, 1  ;;  %p46_p7 = scmp.eq.s32.totalorder %s41_s20, 0 }
   0xd   : > { %p618_p8 = por %p62_p5, %p61_p3  ;;  %p121_p10 = scmp.eq.s32.totalorder %s356_s16, 1 }
   0xe   : > { %p622_p9 = por %p115_p6, %p55_p1  ;;  %p359_p12 = scmp.ge.s32.totalorder %s551_s14, 2 }
   0xf   : > { %s627_s23 = scalar_select %p46_p7, %s539_s11, %s48_s18  }
  0x10   : > { %p629_p11 = por %p121_p10, %p61_p3  ;;  %p385_p13 = scmp.lt.s32.totalorder %s551_s14, 2 }
  0x11   : > { %s148_s25 = sand.u32 1, %s539_s11   ;;  %s371_s27 = sshll.u32 %s547_s13, 3 }
  0x12   : > { %s360_s26 = sshll.u32 %s148_s25, 3  ;;  %s161_s30 = scalar_lea.hbm %s694_s0, %s371_s27 }
  0x13   : > { %s152_s3 = scalar_lea.vmem [#allocation2], %s360_s26  ;;  %s163_s5 = sshll.u32 %s161_s30, 4  ;;  %s164_s5 = int_to_ptr.hbm [resolvable:$true] %s163_s5 }
  0x14   : > { %s165_s4 = sshll.u32 %s152_s3, 4  ;;  %p378_p0 = pnand %p385_p13, %p612_p4  ;;  %s166_s4 = int_to_ptr.vmem [resolvable:$true] %s165_s4 }
  0x15   : > { %p363_p1 = scmp.ge.s32.totalorder %s551_s14, 1  ;;  %p170_p2 = scmp.lt.s32.totalorder %s551_s14, 3 }
  0x16   : > { %s149_s6 = scalar_lea.sflag [#allocation3], %s148_s25 }
  0x17   : > { %380 = dma.hbm_to_vmem [thread:$0]  (!%p378_p0), %s164_s5, 128, %s166_s4, %s149_s6  }
  0x18   : > { %p171_p3 = pnand %p363_p1, %p170_p2 }
  0x19   : > { %s645_s7 = sand.u32 (!%p171_p3), 1, %s535_s10  }
  0x1a   : > { %174 = sbr.rel (%p171_p3) target bundleno = 160 (0xa0), region = 28  ;;  %s364_s8 = sshll.u32 (!%p171_p3), %s645_s7, 3 }
  0x1b   : > { %s177_s15 = scalar_lea.sflag (!%p171_p3), [#allocation3], %s645_s7  ;;  %s180_s16 = scalar_lea.vmem (!%p171_p3), [#allocation2], %s364_s8 }
  0x1f   : > { %522 = dma.done.wait (%p618_p8), %s177_s15, 128  }
  0x20   : > { %524 = vsyncadd (%p618_p8), %s177_s15, 4294967168  ;;  %v553_v0 = vmov 0   ;;  %v213_v1 = vld [vmem:[%s695_s1] sm:$0xf]  ;;  %v554_v2 = vmov 839922192  }
  0x21   : > { %438 = vset.pattern.permute.xlu0 %v553_v0  ;;  %v219_v3 = vunpack.c.l.s4 %v554_v2  ;;  %s372_s20 = sshll.u32 %s543_s12, 3  ;;  %v212_v6 = vld [vmem:[%s180_s16] sm:$0xff]  ;;  %s205_s27 = scalar_lea.vmem [#allocation5], %s364_s8  ;;  %v555_v9 = vmov 0.28284273  }
  0x22   : > { %216 = vperm.xlu0 %438, %v213_v1   ;;  %s244_s21 = scalar_lea.hbm %s696_s2, %s372_s20  ;;  %s246_s28 = sshll.u32 %s205_s27, 4  ;;  %s247_s28 = int_to_ptr.vmem [resolvable:$true] %s246_s28 }
  0x23   : > { %v220_v4 = vunpack.c.0.s8 %v219_v3  ;;  %s248_s29 = sshll.u32 %s244_s21, 4  ;;  %s229_s12 = scalar_lea.sflag [#allocation4], %s645_s7  ;;  %s249_s29 = int_to_ptr.hbm [resolvable:$true] %s248_s29 }
  0x24   : > { %s483_s30 = sshra.s32 %s249_s29, 4  ;;  %s489_s6 = scalar_lea.hbm %s696_s2, 16  ;;  %s484_s30 = int_to_ptr.hbm [resolvable:$true] %s483_s30 }
  0x25   : > { %s485_s3 = scalar_lea.hbm %s484_s30, 8  ;;  %p490_p7 = scmp.lt.s32.totalorder %s484_s30, %s696_s2 }
  0x26   : > { %p486_p4 = scmp.ne.s32.totalorder %s484_s30, %s485_s3  ;;  %p491_p8 = scmp.lt.s32.totalorder %s489_s6, %s485_s3 }
  0x28   : > { %p487_p5 = pnand %p486_p4, %p622_p9  ;;  %p492_p10 = por %p491_p8, %p490_p7 }
  0x2a   : > { %p488_p6 = pneg %p487_p5 }
  0x2c   : > { %p493_p13 = pnand %p492_p10, %p488_p6 }
  0x94   : > { %v217_v5 = vpop.permute.xlu0 %216 }
  0x95   : > { %v221_v7 = vperm.slane %v217_v5, %v220_v4 }
  0x97   : > { %v223_v8 = vadd.f32 %v221_v7, %v212_v6 }
  0x99   : > { %vm224_vm0 = vcmp.ge.f32.partialorder %v223_v8, 0.0 }
  0x9a   : > { %v225_v10 = vsel %vm224_vm0, 1.4142135, %v555_v9 }
  0x9b   : > { %v226_v11 = vmul.f32 %v225_v10, %v223_v8 }
  0x9d   : > { %227 = vst [vmem:[%s205_s27] sm:$0xff] %v226_v11 }
  0x9e   : > { %496 = shalt.err (!%p493_p13)
}
  0x9f   : > { %375 = dma.vmem_to_hbm [thread:$0]  (%p622_p9), %s247_s28, 128, %s249_s29, %s229_s12  }
  0xa0 PF: > { %s260_s7 = sand.u32 1, %s531_s9   ;;  %p382_p0 = pnand %p359_p12, %p629_p11 }
  0xa1   : > { %s261_s16 = scalar_lea.sflag [#allocation4], %s260_s7 }
  0xa2   : > { %p383_p1 = pneg %p382_p0 }
  0xa4   : > { %526 = dma.done.wait (%p383_p1), %s261_s16, 128  }
  0xa5   : > { %528 = vsyncadd (%p383_p1), %s261_s16, 4294967168  ;;  %s18_s14 = sadd.s32 1, %s551_s14   ;;  %s701_s9 = smov %s535_s10 }
  0xa6   : > { %p15_p2 = scmp.ge.s32.totalorder %s18_s14, 4   ;;  %s702_s10 = smov %s539_s11 }
  0xa7   : > { %s703_s11 = smov %s627_s23  ;;  %s704_s12 = smov %s547_s13 }
  0xa8   : > { %s705_s13 = smov %s707_s17  ;;  %17 = sbr.rel (!%p15_p2) target bundleno = 6 (0x6), region = 76 }
  0xad   :  { %267 = vsyncpa [#allocation3], 1 }
  0xae   :  { %269 = vsyncpa [#allocation3 + $0x1], 1 }
  0xaf   :  { %270 = vsyncpa [#allocation4], 1 }
  0xb0   :  { %272 = vsyncpa [#allocation4 + $0x1], 1 }

</bundles_post_ra>
